<compile_context>
chip_gen: v7x
topology: tpu7x:2x2x1
jax: 0.10.0
libtpu: 0.0.40
codegen_flags: <defaults>
</compile_context>

<pallas_src>
import jax
import jax.numpy as jnp
from jax.experimental import pallas as pl
from jax.experimental.pallas import tpu as pltpu

PCT = 0.5  # module default

_TARGET_TILE_BYTES = 2 << 20  # ~2 MiB per block; 2x-in + 2x-out stays <= 8 MiB VMEM


def _sublane_multiple(dtype):
    """Packed sublane multiple: 8 for 4-byte, 16 for 2-byte, 32 for 1-byte dtypes."""
    return max(8, 32 // jnp.dtype(dtype).itemsize)


def _largest_tile(n, mult, max_tile):
    """Largest t with t | n, (t % mult == 0 or t == n), t <= max_tile.
    Falls back to the smallest legal divisor (or n) if nothing fits the budget
    (e.g. awkward/prime n) — acceptable here since slabs are small."""
    if n <= max_tile:
        return n
    best = None
    t = mult
    while t <= n:
        if n % t == 0:
            if t <= max_tile:
                best = t
            else:
                if best is None:
                    best = t
                break
        t += mult
    return best if best is not None else n


def _pick_tiles(C, R, L, itemsize, sub, target_bytes=_TARGET_TILE_BYTES):
    """Pick (tc, tr) for a (1, tc, tr, L) block.  Prefer the whole channel axis in
    the block (fewest grid steps); only tile channels when even a minimal row tile
    would overshoot the budget."""
    row_bytes = L * itemsize
    tr = _largest_tile(R, sub, max(1, target_bytes // max(1, C * row_bytes)))
    tc = C
    if C * tr * row_bytes > target_bytes:
        tc = _largest_tile(C, 1, max(1, target_bytes // max(1, tr * row_bytes)))
    return tc, tr


def _copy_flip_channels_kernel(x_ref, o_ref):
    # x_ref / o_ref: (1, tc, tr, L).  Reverse the channel axis inside the block.
    # tc is tiny for images (1/3/4), so this fully unrolls into static sub-tile
    # copies; each (tr, L) tile is copied unchanged (pure VMEM addressing).
    tc = x_ref.shape[1]
    for c in range(tc):
        o_ref[0, c, :, :] = x_ref[0, tc - 1 - c, :, :]


def _fliplr_copy_call(x):
    """x: [B, C, R, L].  One streaming copy of the tensor that reverses axis 1.
    Channel-*block* reversal lives in the input index_map (DMA addressing); the
    within-block reversal is the unrolled copy in the kernel body."""
    B, C, R, L = x.shape
    sub = _sublane_multiple(x.dtype)
    tc, tr = _pick_tiles(C, R, L, x.dtype.itemsize, sub)
    n_cb = C // tc

    # Give v7x's 2 TensorCores something to shard when the grid would otherwise be
    # a single step (near-neutral on single-TC v5e/v6e).
    if B * n_cb * (R // tr) < 2 and tr == R and R % (2 * sub) == 0:
        tr = R // 2

    grid = (B, n_cb, R // tr)

    def in_map(b, cb, rb):
        return (b, (n_cb - 1) - cb, rb, 0)

    def out_map(b, cb, rb):
        return (b, cb, rb, 0)

    return pl.pallas_call(
        _copy_flip_channels_kernel,
        out_shape=jax.ShapeDtypeStruct(x.shape, x.dtype),
        grid=grid,
        in_specs=[pl.BlockSpec((1, tc, tr, L), in_map)],
        out_specs=pl.BlockSpec((1, tc, tr, L), out_map),
        compiler_params=pltpu.CompilerParams(
            dimension_semantics=("parallel", "parallel", "parallel")),
        cost_estimate=pl.CostEstimate(
            flops=0, transcendentals=0,
            bytes_accessed=2 * x.size * x.dtype.itemsize),
    )(x)


def _fold_lane_dense(image):
    """If W is not lane-dense but the contiguous (H, W) slab can be folded to a
    multiple-of-128 last dim, do so (free reshape for NCHW; the dim-1 flip is
    unaffected by how the trailing dims are folded)."""
    B, C, H, W = image.shape
    HW = H * W
    if W % 128 != 0 and HW % 128 == 0:
        for L in (1024, 512, 256, 128):
            if HW % L == 0:
                return image.reshape(B, C, HW // L, L), True
    return image, False


def _fliplr_pallas(image):
    """torch.fliplr(image) on an NCHW tensor via the Pallas streaming copy."""
    B, C, H, W = image.shape
    x, folded = _fold_lane_dense(image)
    out = _fliplr_copy_call(x)
    return out.reshape(B, C, H, W) if folded else out


def horizontal_flip(image, flip_flag):
    """flip_flag: scalar (or shape-(1,)) bool/int; nonzero => torch.fliplr(image).
    The Pallas kernel is skipped entirely (no HBM traffic) on the identity path."""
    flip = jnp.asarray(flip_flag).reshape(()).astype(jnp.bool_)
    return jax.lax.cond(flip, _fliplr_pallas, lambda img: img, image)


def random_horizontal_flip(image, key, pct=PCT):
    """Module forward: draw u ~ U(0,1); return fliplr(image) if u < pct else image."""
    u = jax.random.uniform(key, ())
    return horizontal_flip(image, u < pct)


if __name__ == "__main__":
    key = jax.random.PRNGKey(0)
    k_img, k_rand = jax.random.split(key)

    # Small deterministic NCHW input.
    x = jax.random.normal(k_img, (2, 4, 16, 16), dtype=jnp.float32)

    # Module forward (random draw inside, same semantics as torch.rand(1) < pct).
    out = jax.jit(random_horizontal_flip)(x, k_rand)
    out = jax.block_until_ready(out)

    u = jax.random.uniform(k_rand, ())
    ref = jnp.where(u < PCT, jnp.flip(x, axis=1), x)
    assert out.shape == x.shape and out.dtype == x.dtype
    assert jnp.array_equal(out, ref), "mismatch vs reference (random branch)"

    # Exercise both cond branches deterministically (flip branch runs the kernel).
    out_flip = jax.block_until_ready(horizontal_flip(x, jnp.int32(1)))
    out_id = jax.block_until_ready(horizontal_flip(x, jnp.int32(0)))
    assert jnp.array_equal(out_flip, jnp.flip(x, axis=1)), "flip branch mismatch"
    assert jnp.array_equal(out_id, x), "identity branch mismatch"

    # Hit the kernel directly on a non-foldable width (masked lane-tail path).
    y = jax.random.normal(k_rand, (1, 3, 24, 20), dtype=jnp.float32)
    out_y = jax.block_until_ready(_fliplr_pallas(y))
    assert jnp.array_equal(out_y, jnp.flip(y, axis=1)), "direct kernel mismatch"

    print("KERNEL_OK")
</pallas_src>

<mosaic_0001>
module attributes {stable_mosaic.version = 11 : i64} {
  func.func @_copy_flip_channels_kernel(%arg0: i32, %arg1: i32, %arg2: i32, %arg3: memref<1x4x1x256xf32, #tpu.memory_space<vmem>>, %arg4: memref<1x4x1x256xf32, #tpu.memory_space<vmem>>) attributes {dimension_semantics = [#tpu.dimension_semantics<parallel>, #tpu.dimension_semantics<parallel>, #tpu.dimension_semantics<parallel>], iteration_bounds = array<i64: 2, 1, 1>, scalar_prefetch = 0 : i64, scratch_operands = 0 : i64, tpu.core_type = #tpu.core_type<tc>, window_params = [{transform_indices = @transform_0, window_bounds = array<i64: 1, 4, 1, 256>}, {transform_indices = @transform_1, window_bounds = array<i64: 1, 4, 1, 256>}]} {
    %c0 = arith.constant 0 : index
    %c3 = arith.constant 3 : index
    %c0_0 = arith.constant 0 : index
    %c0_1 = arith.constant 0 : index
    %0 = vector.load %arg3[%c0, %c3, %c0_0, %c0_1] : memref<1x4x1x256xf32, #tpu.memory_space<vmem>>, vector<1x1x1x256xf32>
    %1 = vector.shape_cast %0 : vector<1x1x1x256xf32> to vector<1x256xf32>
    %c0_2 = arith.constant 0 : index
    %c0_3 = arith.constant 0 : index
    %c0_4 = arith.constant 0 : index
    %c0_5 = arith.constant 0 : index
    %2 = vector.load %arg4[%c0_2, %c0_3, %c0_4, %c0_5] : memref<1x4x1x256xf32, #tpu.memory_space<vmem>>, vector<1x1x1x256xf32>
    %3 = vector.shape_cast %2 : vector<1x1x1x256xf32> to vector<1x256xf32>
    %4 = vector.shape_cast %1 : vector<1x256xf32> to vector<1x1x1x256xf32>
    tpu.vector_store %arg4[%c0_2, %c0_3, %c0_4, %c0_5], %4 {strides = array<i32>} : memref<1x4x1x256xf32, #tpu.memory_space<vmem>>, vector<1x1x1x256xf32>,
    %c0_6 = arith.constant 0 : index
    %c2 = arith.constant 2 : index
    %c0_7 = arith.constant 0 : index
    %c0_8 = arith.constant 0 : index
    %5 = vector.load %arg3[%c0_6, %c2, %c0_7, %c0_8] : memref<1x4x1x256xf32, #tpu.memory_space<vmem>>, vector<1x1x1x256xf32>
    %6 = vector.shape_cast %5 : vector<1x1x1x256xf32> to vector<1x256xf32>
    %c0_9 = arith.constant 0 : index
    %c1 = arith.constant 1 : index
    %c0_10 = arith.constant 0 : index
    %c0_11 = arith.constant 0 : index
    %7 = vector.load %arg4[%c0_9, %c1, %c0_10, %c0_11] : memref<1x4x1x256xf32, #tpu.memory_space<vmem>>, vector<1x1x1x256xf32>
    %8 = vector.shape_cast %7 : vector<1x1x1x256xf32> to vector<1x256xf32>
    %9 = vector.shape_cast %6 : vector<1x256xf32> to vector<1x1x1x256xf32>
    tpu.vector_store %arg4[%c0_9, %c1, %c0_10, %c0_11], %9 {strides = array<i32>} : memref<1x4x1x256xf32, #tpu.memory_space<vmem>>, vector<1x1x1x256xf32>,
    %c0_12 = arith.constant 0 : index
    %c1_13 = arith.constant 1 : index
    %c0_14 = arith.constant 0 : index
    %c0_15 = arith.constant 0 : index
    %10 = vector.load %arg3[%c0_12, %c1_13, %c0_14, %c0_15] : memref<1x4x1x256xf32, #tpu.memory_space<vmem>>, vector<1x1x1x256xf32>
    %11 = vector.shape_cast %10 : vector<1x1x1x256xf32> to vector<1x256xf32>
    %c0_16 = arith.constant 0 : index
    %c2_17 = arith.constant 2 : index
    %c0_18 = arith.constant 0 : index
    %c0_19 = arith.constant 0 : index
    %12 = vector.load %arg4[%c0_16, %c2_17, %c0_18, %c0_19] : memref<1x4x1x256xf32, #tpu.memory_space<vmem>>, vector<1x1x1x256xf32>
    %13 = vector.shape_cast %12 : vector<1x1x1x256xf32> to vector<1x256xf32>
    %14 = vector.shape_cast %11 : vector<1x256xf32> to vector<1x1x1x256xf32>
    tpu.vector_store %arg4[%c0_16, %c2_17, %c0_18, %c0_19], %14 {strides = array<i32>} : memref<1x4x1x256xf32, #tpu.memory_space<vmem>>, vector<1x1x1x256xf32>,
    %c0_20 = arith.constant 0 : index
    %c0_21 = arith.constant 0 : index
    %c0_22 = arith.constant 0 : index
    %c0_23 = arith.constant 0 : index
    %15 = vector.load %arg3[%c0_20, %c0_21, %c0_22, %c0_23] : memref<1x4x1x256xf32, #tpu.memory_space<vmem>>, vector<1x1x1x256xf32>
    %16 = vector.shape_cast %15 : vector<1x1x1x256xf32> to vector<1x256xf32>
    %c0_24 = arith.constant 0 : index
    %c3_25 = arith.constant 3 : index
    %c0_26 = arith.constant 0 : index
    %c0_27 = arith.constant 0 : index
    %17 = vector.load %arg4[%c0_24, %c3_25, %c0_26, %c0_27] : memref<1x4x1x256xf32, #tpu.memory_space<vmem>>, vector<1x1x1x256xf32>
    %18 = vector.shape_cast %17 : vector<1x1x1x256xf32> to vector<1x256xf32>
    %19 = vector.shape_cast %16 : vector<1x256xf32> to vector<1x1x1x256xf32>
    tpu.vector_store %arg4[%c0_24, %c3_25, %c0_26, %c0_27], %19 {strides = array<i32>} : memref<1x4x1x256xf32, #tpu.memory_space<vmem>>, vector<1x1x1x256xf32>,
    return
  }
  func.func @transform_0(%arg0: i32, %arg1: i32, %arg2: i32) -> (i32, i32, i32, i32) {
    %c0_i32 = arith.constant 0 : i32
    %0 = arith.subi %c0_i32, %arg1 : i32
    %c0_i32_0 = arith.constant 0 : i32
    %c0_i32_1 = arith.constant 0 : i32
    return %arg0, %0, %arg2, %c0_i32_0 : i32, i32, i32, i32
  }
  func.func @transform_1(%arg0: i32, %arg1: i32, %arg2: i32) -> (i32, i32, i32, i32) {
    %c0_i32 = arith.constant 0 : i32
    %c0_i32_0 = arith.constant 0 : i32
    return %arg0, %arg1, %arg2, %c0_i32 : i32, i32, i32, i32
  }
}

</mosaic_0001>

<bundles_post_ra>
// kernel: branch_1_fun.1
= control target key start
LH: loop header
LB: loop body
LE: loop exit
PB: predicated region body
PF: predicated region fallthrough
CT: control target
= control target key end

     0   :  { %s397_s6 = smov 0   ;;  %s399_s7 = smov 0   ;;  %s418_s0 = inlined_call_operand.vmem [shape: f32[2,4,1,256], index: 0, kind: input, shape index: {}]   ;;  %s419_s1 = inlined_call_operand.vmem [shape: f32[2,4,1,256], index: 1, kind: output, shape index: {}]  }
   0x1   :  { %s401_s8 = smov 0  }
   0x2 LB: > { %s30_s9 = sadd.s32 1, %s381_s7  ;;  %p328_p0 = scmp.ge.s32.totalorder %s385_s8, 1  ;;  %s385_s8 = sphi %s401_s8, %s11_s8   ;;  %s381_s7 = sphi %s399_s7, %s421_s7   ;;  %s377_s6 = sphi %s397_s6, %s420_s6  }
   0x3   : > { %p32_p1 = scmp.ge.s32.totalorder %s30_s9, 2  ;;  %p127_p2 = scmp.lt.s32.totalorder %s385_s8, 3 }
   0x5   : > { %s423_s9 = smov (%p32_p1, %s30_s9), 0  ;;  %p128_p3 = pnand %p328_p0, %p127_p2 }
   0x6   : > { %p166_p4 = scmp.lt.s32.totalorder (!%p128_p3), %s377_s6, 1  ;;  %v196_v0 = vlaneseq (!%p128_p3) }
   0x7   : > { %131 = sbr.rel (%p128_p3) target bundleno = 20 (0x14), region = 24 }
   0x8   : > { %vm198_vm0 = vcmp.lt.s32.totalorder (!%p128_p3), %v196_v0, 256 }
   0xe   : > { %s425_s6 = smov (!%p166_p4, %s377_s6), 1 }
   0xf   : > { %s329_s10 = sshll.u32 %s425_s6, 3 }
  0x10   : > { %s177_s13 = scalar_lea.vmem %s418_s0, %s329_s10  ;;  %s192_s16 = scalar_lea.vmem %s419_s1, %s329_s10 }
  0x11   : > { %v331_v1 = vld [vmem:[%s177_s13 + $0x6] sm:$0x3]  ;;  %v332_v2 = vld [vmem:[%s177_s13 + $0x4] sm:$0x3]  ;;  %v334_v3 = vld [vmem:[%s177_s13 + $0x2] sm:$0x3] }
  0x12   : > { %200 = vst.msk [vmem:[%s192_s16] sm:$0x3] %vm198_vm0, %v331_v1  ;;  %333 = vst.msk [vmem:[%s192_s16 + $0x2] sm:$0x3] %vm198_vm0, %v332_v2  ;;  %v209_v4 = vld [vmem:[%s177_s13] sm:$0x3] }
  0x13   : > { %335 = vst.msk [vmem:[%s192_s16 + $0x4] sm:$0x3] %vm198_vm0, %v334_v3  ;;  %336 = vst.msk [vmem:[%s192_s16 + $0x6] sm:$0x3] %vm198_vm0, %v209_v4 }
  0x14 PF: > { %s11_s8 = sadd.s32 1, %s385_s8   ;;  %s420_s6 = smov %s381_s7 }
  0x15   : > { %p8_p5 = scmp.ge.s32.totalorder %s11_s8, 4   ;;  %s421_s7 = smov %s423_s9 }
  0x17   :  { %10 = sbr.rel (!%p8_p5) target bundleno = 2 (0x2), region = 60 }

</bundles_post_ra>
